<compile_context>
chip_gen: v5e
topology: v5e:2x2
jax: 0.10.0
libtpu: 0.0.40
codegen_flags: <defaults>
</compile_context>

<pallas_src>
import jax
import jax.numpy as jnp
from jax import lax
from jax.experimental import pallas as pl
from jax.experimental.pallas import tpu as pltpu

EPS = 1e-5


def _basic_block_kernel(x_ref, w1_ref, w2_ref, p_ref, out_ref):
    """Whole BasicBlock forward in one kernel invocation.

    x_ref    : (N, H, W*Cin) f32       input rows, lane-dense (read once; also identity)
    w1_ref   : (3*W*Cin, W*C) bf16     kh-stacked block-tridiagonal conv1 weights
    w2_ref   : (3*W*C,  W*C) bf16      kh-stacked block-tridiagonal conv2 weights
    p_ref    : (4, C) f32              rows = [gamma1, beta1, gamma2, beta2]
    out_ref  : (N, H, W*C) f32         lane-dense output (full 128-lane stores)
    """
    N, H, WC = out_ref.shape
    C = p_ref.shape[-1]
    W = WC // C
    NH = N * H
    inv_cnt = 1.0 / float(N * H * W)

    x = x_ref[...]                                   # (N, H, W*Cin) f32
    x_bf = x.astype(jnp.bfloat16)                    # single up-front bf16 cast

    # Per-channel lane selectors, generated in-kernel (no HBM inputs / DMAs).
    #   sel[c, l]  = 1 if (l % C) == c   -> lane broadcast (1, C) -> (1, W*C)
    #   selt[l, c] = sel[c, l]           -> lane-group reduce (1, W*C) -> (1, C)
    lane = lax.broadcasted_iota(jnp.int32, (C, WC), 1) % C
    chan = lax.broadcasted_iota(jnp.int32, (C, WC), 0)
    sel = (lane == chan).astype(jnp.float32)                       # (C, W*C)
    lane_t = lax.broadcasted_iota(jnp.int32, (WC, C), 0) % C
    chan_t = lax.broadcasted_iota(jnp.int32, (WC, C), 1)
    selt = (lane_t == chan_t).astype(jnp.float32)                  # (W*C, C)

    def conv3x3(v_bf, w_ref):
        # 3x3 conv as ONE lane-dense full-K bf16 matmul: the three kh taps are
        # concatenated along the contraction axis (kh-major, matching the weight
        # stacking); the kw halo lives in the banded weight matrix, the kh halo
        # is two in-register zero rows.
        wcin = v_bf.shape[-1]
        zrow = jnp.zeros((N, 1, wcin), jnp.bfloat16)
        up = jnp.concatenate([zrow, v_bf[:, :H - 1, :]], axis=1)   # row h-1 (kh=0)
        dn = jnp.concatenate([v_bf[:, 1:, :], zrow], axis=1)       # row h+1 (kh=2)
        lhs = jnp.concatenate([up, v_bf, dn], axis=-1)             # (N, H, 3*W*Cin)
        lhs = lhs.reshape(NH, 3 * wcin)
        return jnp.dot(lhs, w_ref[...], preferred_element_type=jnp.float32)  # (NH, W*C)

    def bn(acc, g, b):
        # Training-mode BatchNorm2d: one-pass per-channel stats (sum & sum-of-squares),
        # var = max(E[x^2] - E[x]^2, 0), all accumulation in f32.  Both helper matmuls
        # are fused (stats stacked, scale/shift stacked).
        ls = jnp.sum(acc, axis=0, keepdims=True)                   # (1, W*C)
        lq = jnp.sum(acc * acc, axis=0, keepdims=True)             # (1, W*C)
        stats = jnp.concatenate([ls, lq], axis=0)                  # (2, W*C)
        cstats = jnp.dot(stats, selt, preferred_element_type=jnp.float32)   # (2, C)
        mean = cstats[0:1, :] * inv_cnt
        var = jnp.maximum(cstats[1:2, :] * inv_cnt - mean * mean, 0.0)
        scale = g * lax.rsqrt(var + EPS)                           # (1, C)
        shift = b - mean * scale                                   # (1, C)
        ss = jnp.concatenate([scale, shift], axis=0)               # (2, C)
        ss_l = jnp.dot(ss, sel, preferred_element_type=jnp.float32)          # (2, W*C)
        return acc * ss_l[0:1, :] + ss_l[1:2, :]

    # conv1 -> bn1 -> relu
    acc1 = conv3x3(x_bf, w1_ref)
    y1 = jnp.maximum(bn(acc1, p_ref[0:1, :], p_ref[1:2, :]), 0.0)

    # conv2 -> bn2
    acc2 = conv3x3(y1.astype(jnp.bfloat16).reshape(N, H, WC), w2_ref)
    y2 = bn(acc2, p_ref[2:3, :], p_ref[3:4, :])

    # residual add (f32 identity, same tile read at kernel entry) + relu
    out = jnp.maximum(y2 + x.reshape(NH, WC), 0.0)
    out_ref[...] = out.reshape(N, H, WC)


def _banded_conv_weights(w_hwio, width, dtype=jnp.bfloat16):
    """(3,3,Cin,Cout) HWIO -> (3*width*Cin, width*Cout) kh-stacked block-tridiagonal matrix.

    big[kh, wi*Cin+ci, wo*Cout+co] = w[kh, wi-wo+1, ci, co] if |wi-wo| <= 1 else 0,
    then the kh axis is merged into the contraction axis (kh-major) so one full-K MXU
    matmul against the kh-concatenated lane-dense image rows computes the whole conv.
    """
    kh, kw, cin, cout = w_hwio.shape
    wi = jnp.arange(width)[:, None]
    wo = jnp.arange(width)[None, :]
    rel = wi - wo + 1                                                # (W, W) -> kw index
    valid = ((rel >= 0) & (rel <= kw - 1)).astype(w_hwio.dtype)
    big = w_hwio[:, jnp.clip(rel, 0, kw - 1)]                        # (3, W, W, Cin, Cout)
    big = big * valid[None, :, :, None, None]
    big = jnp.transpose(big, (0, 1, 3, 2, 4)).reshape(kh, width * cin, width * cout)
    return big.reshape(kh * width * cin, width * cout).astype(dtype)


def basic_block_forward(x_nchw, w1, w2, g1, b1, g2, b2):
    """BasicBlock forward. Input/output are NCHW (PyTorch convention)."""
    x = jnp.transpose(x_nchw, (0, 2, 3, 1)).astype(jnp.float32)      # NCHW -> NHWC
    N, H, W, Cin = x.shape
    C = w1.shape[-1]
    WC = W * C

    x_lane = x.reshape(N, H, W * Cin)                # lane-dense rows (W*Cin = 128 here)
    w1_big = _banded_conv_weights(w1, W)             # (3*W*Cin, W*C) bf16
    w2_big = _banded_conv_weights(w2, W)             # (3*W*C,  W*C) bf16
    params = jnp.stack([g1, b1, g2, b2]).astype(jnp.float32)         # (4, C)

    vmem = pl.BlockSpec(memory_space=pltpu.MemorySpace.VMEM)
    out = pl.pallas_call(
        _basic_block_kernel,
        out_shape=jax.ShapeDtypeStruct((N, H, WC), jnp.float32),
        in_specs=[vmem] * 4,
        out_specs=vmem,
        # Actual footprint at this shape is <1 MiB; keep the request modest so the
        # same kernel leaves headroom on v7x (64 MiB physical VMEM).
        compiler_params=pltpu.CompilerParams(vmem_limit_bytes=16 * 1024 * 1024),
    )(x_lane, w1_big, w2_big, params)

    return jnp.transpose(out.reshape(N, H, W, C), (0, 3, 1, 2))      # NHWC -> NCHW


def basic_block_reference(x_nchw, w1, w2, g1, b1, g2, b2):
    """Pure-JAX f32 reference (lax conv + batch-stat BN) for correctness checking."""
    x = jnp.transpose(x_nchw, (0, 2, 3, 1)).astype(jnp.float32)

    def conv(inp, w):
        return lax.conv_general_dilated(
            inp, w, window_strides=(1, 1), padding=((1, 1), (1, 1)),
            dimension_numbers=("NHWC", "HWIO", "NHWC"))

    def bn(inp, g, b):
        m = jnp.mean(inp, axis=(0, 1, 2), keepdims=True)
        v = jnp.mean((inp - m) ** 2, axis=(0, 1, 2), keepdims=True)
        return (inp - m) * lax.rsqrt(v + EPS) * g + b

    out = jnp.maximum(bn(conv(x, w1), g1, b1), 0.0)
    out = bn(conv(out, w2), g2, b2)
    out = jnp.maximum(out + x, 0.0)
    return jnp.transpose(out, (0, 3, 1, 2))


if __name__ == "__main__":
    key = jax.random.PRNGKey(0)
    k_x, k_w1, k_w2, k_g1, k_b1, k_g2, k_b2 = jax.random.split(key, 7)

    # BasicBlock(inplanes=8, planes=8, stride=1, downsample=None); W*C = 16*8 = 128 lanes.
    N, Cin, H, W = 2, 8, 16, 16
    C = 8  # planes (expansion = 1)

    x = jax.random.normal(k_x, (N, Cin, H, W), jnp.float32)

    # conv3x3 weights, HWIO layout, kaiming-ish scale, no bias (bias=False).
    fan_in1 = 3 * 3 * Cin
    fan_in2 = 3 * 3 * C
    w1 = jax.random.normal(k_w1, (3, 3, Cin, C), jnp.float32) * (2.0 / fan_in1) ** 0.5
    w2 = jax.random.normal(k_w2, (3, 3, C, C), jnp.float32) * (2.0 / fan_in2) ** 0.5

    # BatchNorm2d affine params (deterministic, non-trivial).
    g1 = 1.0 + 0.1 * jax.random.normal(k_g1, (C,), jnp.float32)
    b1 = 0.1 * jax.random.normal(k_b1, (C,), jnp.float32)
    g2 = 1.0 + 0.1 * jax.random.normal(k_g2, (C,), jnp.float32)
    b2 = 0.1 * jax.random.normal(k_b2, (C,), jnp.float32)

    out = jax.block_until_ready(basic_block_forward(x, w1, w2, g1, b1, g2, b2))
    ref = jax.block_until_ready(basic_block_reference(x, w1, w2, g1, b1, g2, b2))

    assert out.shape == (N, C, H, W)
    max_err = float(jnp.max(jnp.abs(out - ref)))
    # bf16 MXU operands vs f32 reference -> small rounding noise; stats/accumulation are f32.
    assert jnp.allclose(out, ref, rtol=2e-2, atol=2e-2), f"mismatch vs reference (max_err={max_err})"

    print("KERNEL_OK")
</pallas_src>

<mosaic_0001>
module attributes {stable_mosaic.version = 11 : i64} {
  func.func @_basic_block_kernel(%arg0: memref<2x16x128xf32, #tpu.memory_space<vmem>>, %arg1: memref<384x128xbf16, #tpu.memory_space<vmem>>, %arg2: memref<384x128xbf16, #tpu.memory_space<vmem>>, %arg3: memref<4x8xf32, #tpu.memory_space<vmem>>, %arg4: memref<2x16x128xf32, #tpu.memory_space<vmem>>) attributes {dimension_semantics = [], scalar_prefetch = 0 : i64, scratch_operands = 0 : i64, tpu.core_type = #tpu.core_type<tc>} {
    %c0 = arith.constant 0 : index
    %c0_0 = arith.constant 0 : index
    %c0_1 = arith.constant 0 : index
    %0 = vector.load %arg0[%c0, %c0_0, %c0_1] : memref<2x16x128xf32, #tpu.memory_space<vmem>>, vector<2x16x128xf32>
    %1 = arith.truncf %0 : vector<2x16x128xf32> to vector<2x16x128xbf16>
    %2 = tpu.iota {dimensions = array<i32: 1>} : vector<8x128xi32>
    %c8_i32 = arith.constant 8 : i32
    %c0_i32 = arith.constant 0 : i32
    %3 = arith.cmpi eq, %c8_i32, %c0_i32 : i32
    %c1_i32 = arith.constant 1 : i32
    %4 = arith.select %3, %c1_i32, %c8_i32 : i32
    %5 = vector.broadcast %4 : i32 to vector<8x128xi32>
    %6 = arith.remsi %2, %5 : vector<8x128xi32>
    %c0_i32_2 = arith.constant 0 : i32
    %7 = vector.broadcast %c0_i32_2 : i32 to vector<8x128xi32>
    %8 = arith.cmpi ne, %6, %7 : vector<8x128xi32>
    %c0_i32_3 = arith.constant 0 : i32
    %9 = vector.broadcast %c0_i32_3 : i32 to vector<8x128xi32>
    %10 = arith.cmpi slt, %6, %9 : vector<8x128xi32>
    %c0_i32_4 = arith.constant 0 : i32
    %11 = arith.cmpi slt, %4, %c0_i32_4 : i32
    %12 = vector.broadcast %11 : i1 to vector<8x128xi1>
    %13 = vector.broadcast %12 : vector<8x128xi1> to vector<8x128xi1>
    %14 = arith.xori %10, %13 : vector<8x128xi1>
    %15 = arith.andi %14, %8 : vector<8x128xi1>
    %16 = vector.broadcast %4 : i32 to vector<8x128xi32>
    %17 = arith.addi %6, %16 : vector<8x128xi32>
    %18 = arith.select %15, %17, %6 : vector<8x128xi1>, vector<8x128xi32>
    %19 = tpu.iota {dimensions = array<i32: 0>} : vector<8x128xi32>
    %20 = arith.cmpi eq, %18, %19 : vector<8x128xi32>
    %21 = arith.extui %20 : vector<8x128xi1> to vector<8x128xi32>
    %22 = arith.sitofp %21 : vector<8x128xi32> to vector<8x128xf32>
    %23 = tpu.iota {dimensions = array<i32: 0>} : vector<128x8xi32>
    %c8_i32_5 = arith.constant 8 : i32
    %c0_i32_6 = arith.constant 0 : i32
    %24 = arith.cmpi eq, %c8_i32_5, %c0_i32_6 : i32
    %c1_i32_7 = arith.constant 1 : i32
    %25 = arith.select %24, %c1_i32_7, %c8_i32_5 : i32
    %26 = vector.broadcast %25 : i32 to vector<128x8xi32>
    %27 = arith.remsi %23, %26 : vector<128x8xi32>
    %c0_i32_8 = arith.constant 0 : i32
    %28 = vector.broadcast %c0_i32_8 : i32 to vector<128x8xi32>
    %29 = arith.cmpi ne, %27, %28 : vector<128x8xi32>
    %c0_i32_9 = arith.constant 0 : i32
    %30 = vector.broadcast %c0_i32_9 : i32 to vector<128x8xi32>
    %31 = arith.cmpi slt, %27, %30 : vector<128x8xi32>
    %c0_i32_10 = arith.constant 0 : i32
    %32 = arith.cmpi slt, %25, %c0_i32_10 : i32
    %33 = vector.broadcast %32 : i1 to vector<128x8xi1>
    %34 = vector.broadcast %33 : vector<128x8xi1> to vector<128x8xi1>
    %35 = arith.xori %31, %34 : vector<128x8xi1>
    %36 = arith.andi %35, %29 : vector<128x8xi1>
    %37 = vector.broadcast %25 : i32 to vector<128x8xi32>
    %38 = arith.addi %27, %37 : vector<128x8xi32>
    %39 = arith.select %36, %38, %27 : vector<128x8xi1>, vector<128x8xi32>
    %40 = tpu.iota {dimensions = array<i32: 1>} : vector<128x8xi32>
    %41 = arith.cmpi eq, %39, %40 : vector<128x8xi32>
    %42 = arith.extui %41 : vector<128x8xi1> to vector<128x8xi32>
    %43 = arith.sitofp %42 : vector<128x8xi32> to vector<128x8xf32>
    %cst = arith.constant 0.000000e+00 : bf16
    %44 = vector.broadcast %cst : bf16 to vector<2x1x128xbf16>
    %45 = vector.extract_strided_slice %1 {offsets = [0, 0, 0], sizes = [2, 15, 128], strides = [1, 1, 1]} : vector<2x16x128xbf16> to vector<2x15x128xbf16>
    %46 = tpu.concatenate %44, %45 in 1 : vector<2x1x128xbf16>, vector<2x15x128xbf16> -> vector<2x16x128xbf16>
    %47 = vector.extract_strided_slice %1 {offsets = [0, 1, 0], sizes = [2, 15, 128], strides = [1, 1, 1]} : vector<2x16x128xbf16> to vector<2x15x128xbf16>
    %48 = tpu.concatenate %47, %44 in 1 : vector<2x15x128xbf16>, vector<2x1x128xbf16> -> vector<2x16x128xbf16>
    %49 = tpu.concatenate %46, %1, %48 in 2 : vector<2x16x128xbf16>, vector<2x16x128xbf16>, vector<2x16x128xbf16> -> vector<2x16x384xbf16>
    %50 = vector.shape_cast %49 : vector<2x16x384xbf16> to vector<32x384xbf16>
    %c0_11 = arith.constant 0 : index
    %c0_12 = arith.constant 0 : index
    %51 = vector.load %arg1[%c0_11, %c0_12] : memref<384x128xbf16, #tpu.memory_space<vmem>>, vector<384x128xbf16>
    %cst_13 = arith.constant dense<0.000000e+00> : vector<32x128xf32>
    %52 = tpu.matmul %50, %51, %cst_13 {dimension_numbers = #tpu.dot_dimension_numbers<[1], [0], [0], [1], [0, 0, 1, 1], [], []>} : vector<32x384xbf16>, vector<384x128xbf16>, vector<32x128xf32> -> vector<32x128xf32>
    %c0_14 = arith.constant 0 : index
    %c0_15 = arith.constant 0 : index
    %53 = vector.load %arg3[%c0_14, %c0_15] : memref<4x8xf32, #tpu.memory_space<vmem>>, vector<1x8xf32>
    %c1 = arith.constant 1 : index
    %c0_16 = arith.constant 0 : index
    %54 = vector.load %arg3[%c1, %c0_16] : memref<4x8xf32, #tpu.memory_space<vmem>>, vector<1x8xf32>
    %cst_17 = arith.constant dense<0.000000e+00> : vector<128xf32>
    %55 = vector.multi_reduction <add>, %52, %cst_17 [0] : vector<32x128xf32> to vector<128xf32>
    %56 = vector.shape_cast %55 : vector<128xf32> to vector<1x128xf32>
    %57 = arith.mulf %52, %52 : vector<32x128xf32>
    %cst_18 = arith.constant dense<0.000000e+00> : vector<128xf32>
    %58 = vector.multi_reduction <add>, %57, %cst_18 [0] : vector<32x128xf32> to vector<128xf32>
    %59 = vector.shape_cast %58 : vector<128xf32> to vector<1x128xf32>
    %60 = tpu.concatenate %56, %59 in 0 : vector<1x128xf32>, vector<1x128xf32> -> vector<2x128xf32>
    %cst_19 = arith.constant dense<0.000000e+00> : vector<2x8xf32>
    %61 = tpu.matmul %60, %43, %cst_19 {dimension_numbers = #tpu.dot_dimension_numbers<[1], [0], [0], [1], [0, 0, 1, 1], [], []>} : vector<2x128xf32>, vector<128x8xf32>, vector<2x8xf32> -> vector<2x8xf32>
    %62 = vector.extract_strided_slice %61 {offsets = [0, 0], sizes = [1, 8], strides = [1, 1]} : vector<2x8xf32> to vector<1x8xf32>
    %cst_20 = arith.constant 0.001953125 : f32
    %63 = vector.broadcast %cst_20 : f32 to vector<1x8xf32>
    %64 = arith.mulf %62, %63 : vector<1x8xf32>
    %65 = vector.extract_strided_slice %61 {offsets = [1, 0], sizes = [1, 8], strides = [1, 1]} : vector<2x8xf32> to vector<1x8xf32>
    %cst_21 = arith.constant 0.001953125 : f32
    %66 = vector.broadcast %cst_21 : f32 to vector<1x8xf32>
    %67 = arith.mulf %65, %66 : vector<1x8xf32>
    %68 = arith.mulf %64, %64 : vector<1x8xf32>
    %69 = arith.subf %67, %68 : vector<1x8xf32>
    %cst_22 = arith.constant 0.000000e+00 : f32
    %70 = vector.broadcast %cst_22 : f32 to vector<1x8xf32>
    %71 = arith.maximumf %69, %70 : vector<1x8xf32>
    %cst_23 = arith.constant 9.99999974E-6 : f32
    %72 = vector.broadcast %cst_23 : f32 to vector<1x8xf32>
    %73 = arith.addf %71, %72 : vector<1x8xf32>
    %74 = math.rsqrt %73 : vector<1x8xf32>
    %75 = arith.mulf %53, %74 : vector<1x8xf32>
    %76 = arith.mulf %64, %75 : vector<1x8xf32>
    %77 = arith.subf %54, %76 : vector<1x8xf32>
    %78 = tpu.concatenate %75, %77 in 0 : vector<1x8xf32>, vector<1x8xf32> -> vector<2x8xf32>
    %cst_24 = arith.constant dense<0.000000e+00> : vector<2x128xf32>
    %79 = tpu.matmul %78, %22, %cst_24 {dimension_numbers = #tpu.dot_dimension_numbers<[1], [0], [0], [1], [0, 0, 1, 1], [], []>} : vector<2x8xf32>, vector<8x128xf32>, vector<2x128xf32> -> vector<2x128xf32>
    %80 = vector.extract_strided_slice %79 {offsets = [0, 0], sizes = [1, 128], strides = [1, 1]} : vector<2x128xf32> to vector<1x128xf32>
    %81 = vector.broadcast %80 : vector<1x128xf32> to vector<32x128xf32>
    %82 = arith.mulf %52, %81 : vector<32x128xf32>
    %83 = vector.extract_strided_slice %79 {offsets = [1, 0], sizes = [1, 128], strides = [1, 1]} : vector<2x128xf32> to vector<1x128xf32>
    %84 = vector.broadcast %83 : vector<1x128xf32> to vector<32x128xf32>
    %85 = arith.addf %82, %84 : vector<32x128xf32>
    %cst_25 = arith.constant 0.000000e+00 : f32
    %86 = vector.broadcast %cst_25 : f32 to vector<32x128xf32>
    %87 = arith.maximumf %85, %86 : vector<32x128xf32>
    %88 = arith.truncf %87 : vector<32x128xf32> to vector<32x128xbf16>
    %89 = vector.shape_cast %88 : vector<32x128xbf16> to vector<2x16x128xbf16>
    %cst_26 = arith.constant 0.000000e+00 : bf16
    %90 = vector.broadcast %cst_26 : bf16 to vector<2x1x128xbf16>
    %91 = vector.extract_strided_slice %89 {offsets = [0, 0, 0], sizes = [2, 15, 128], strides = [1, 1, 1]} : vector<2x16x128xbf16> to vector<2x15x128xbf16>
    %92 = tpu.concatenate %90, %91 in 1 : vector<2x1x128xbf16>, vector<2x15x128xbf16> -> vector<2x16x128xbf16>
    %93 = vector.extract_strided_slice %89 {offsets = [0, 1, 0], sizes = [2, 15, 128], strides = [1, 1, 1]} : vector<2x16x128xbf16> to vector<2x15x128xbf16>
    %94 = tpu.concatenate %93, %90 in 1 : vector<2x15x128xbf16>, vector<2x1x128xbf16> -> vector<2x16x128xbf16>
    %95 = tpu.concatenate %92, %89, %94 in 2 : vector<2x16x128xbf16>, vector<2x16x128xbf16>, vector<2x16x128xbf16> -> vector<2x16x384xbf16>
    %96 = vector.shape_cast %95 : vector<2x16x384xbf16> to vector<32x384xbf16>
    %c0_27 = arith.constant 0 : index
    %c0_28 = arith.constant 0 : index
    %97 = vector.load %arg2[%c0_27, %c0_28] : memref<384x128xbf16, #tpu.memory_space<vmem>>, vector<384x128xbf16>
    %cst_29 = arith.constant dense<0.000000e+00> : vector<32x128xf32>
    %98 = tpu.matmul %96, %97, %cst_29 {dimension_numbers = #tpu.dot_dimension_numbers<[1], [0], [0], [1], [0, 0, 1, 1], [], []>} : vector<32x384xbf16>, vector<384x128xbf16>, vector<32x128xf32> -> vector<32x128xf32>
    %c2 = arith.constant 2 : index
    %c0_30 = arith.constant 0 : index
    %99 = vector.load %arg3[%c2, %c0_30] : memref<4x8xf32, #tpu.memory_space<vmem>>, vector<1x8xf32>
    %c3 = arith.constant 3 : index
    %c0_31 = arith.constant 0 : index
    %100 = vector.load %arg3[%c3, %c0_31] : memref<4x8xf32, #tpu.memory_space<vmem>>, vector<1x8xf32>
    %cst_32 = arith.constant dense<0.000000e+00> : vector<128xf32>
    %101 = vector.multi_reduction <add>, %98, %cst_32 [0] : vector<32x128xf32> to vector<128xf32>
    %102 = vector.shape_cast %101 : vector<128xf32> to vector<1x128xf32>
    %103 = arith.mulf %98, %98 : vector<32x128xf32>
    %cst_33 = arith.constant dense<0.000000e+00> : vector<128xf32>
    %104 = vector.multi_reduction <add>, %103, %cst_33 [0] : vector<32x128xf32> to vector<128xf32>
    %105 = vector.shape_cast %104 : vector<128xf32> to vector<1x128xf32>
    %106 = tpu.concatenate %102, %105 in 0 : vector<1x128xf32>, vector<1x128xf32> -> vector<2x128xf32>
    %cst_34 = arith.constant dense<0.000000e+00> : vector<2x8xf32>
    %107 = tpu.matmul %106, %43, %cst_34 {dimension_numbers = #tpu.dot_dimension_numbers<[1], [0], [0], [1], [0, 0, 1, 1], [], []>} : vector<2x128xf32>, vector<128x8xf32>, vector<2x8xf32> -> vector<2x8xf32>
    %108 = vector.extract_strided_slice %107 {offsets = [0, 0], sizes = [1, 8], strides = [1, 1]} : vector<2x8xf32> to vector<1x8xf32>
    %cst_35 = arith.constant 0.001953125 : f32
    %109 = vector.broadcast %cst_35 : f32 to vector<1x8xf32>
    %110 = arith.mulf %108, %109 : vector<1x8xf32>
    %111 = vector.extract_strided_slice %107 {offsets = [1, 0], sizes = [1, 8], strides = [1, 1]} : vector<2x8xf32> to vector<1x8xf32>
    %cst_36 = arith.constant 0.001953125 : f32
    %112 = vector.broadcast %cst_36 : f32 to vector<1x8xf32>
    %113 = arith.mulf %111, %112 : vector<1x8xf32>
    %114 = arith.mulf %110, %110 : vector<1x8xf32>
    %115 = arith.subf %113, %114 : vector<1x8xf32>
    %cst_37 = arith.constant 0.000000e+00 : f32
    %116 = vector.broadcast %cst_37 : f32 to vector<1x8xf32>
    %117 = arith.maximumf %115, %116 : vector<1x8xf32>
    %cst_38 = arith.constant 9.99999974E-6 : f32
    %118 = vector.broadcast %cst_38 : f32 to vector<1x8xf32>
    %119 = arith.addf %117, %118 : vector<1x8xf32>
    %120 = math.rsqrt %119 : vector<1x8xf32>
    %121 = arith.mulf %99, %120 : vector<1x8xf32>
    %122 = arith.mulf %110, %121 : vector<1x8xf32>
    %123 = arith.subf %100, %122 : vector<1x8xf32>
    %124 = tpu.concatenate %121, %123 in 0 : vector<1x8xf32>, vector<1x8xf32> -> vector<2x8xf32>
    %cst_39 = arith.constant dense<0.000000e+00> : vector<2x128xf32>
    %125 = tpu.matmul %124, %22, %cst_39 {dimension_numbers = #tpu.dot_dimension_numbers<[1], [0], [0], [1], [0, 0, 1, 1], [], []>} : vector<2x8xf32>, vector<8x128xf32>, vector<2x128xf32> -> vector<2x128xf32>
    %126 = vector.extract_strided_slice %125 {offsets = [0, 0], sizes = [1, 128], strides = [1, 1]} : vector<2x128xf32> to vector<1x128xf32>
    %127 = vector.broadcast %126 : vector<1x128xf32> to vector<32x128xf32>
    %128 = arith.mulf %98, %127 : vector<32x128xf32>
    %129 = vector.extract_strided_slice %125 {offsets = [1, 0], sizes = [1, 128], strides = [1, 1]} : vector<2x128xf32> to vector<1x128xf32>
    %130 = vector.broadcast %129 : vector<1x128xf32> to vector<32x128xf32>
    %131 = arith.addf %128, %130 : vector<32x128xf32>
    %132 = vector.shape_cast %0 : vector<2x16x128xf32> to vector<32x128xf32>
    %133 = arith.addf %131, %132 : vector<32x128xf32>
    %cst_40 = arith.constant 0.000000e+00 : f32
    %134 = vector.broadcast %cst_40 : f32 to vector<32x128xf32>
    %135 = arith.maximumf %133, %134 : vector<32x128xf32>
    %136 = vector.shape_cast %135 : vector<32x128xf32> to vector<2x16x128xf32>
    %c0_41 = arith.constant 0 : index
    %c0_42 = arith.constant 0 : index
    %c0_43 = arith.constant 0 : index
    %137 = vector.load %arg4[%c0_41, %c0_42, %c0_43] : memref<2x16x128xf32, #tpu.memory_space<vmem>>, vector<2x16x128xf32>
    tpu.vector_store %arg4[%c0_41, %c0_42, %c0_43], %136 {strides = array<i32>} : memref<2x16x128xf32, #tpu.memory_space<vmem>>, vector<2x16x128xf32>,
    return
  }
}

</mosaic_0001>

<bundles_post_ra>
// kernel: tpu_custom_call.1
= control target key start
LH: loop header
LB: loop body
LE: loop exit
PB: predicated region body
PF: predicated region fallthrough
CT: control target
= control target key end

     0   :  { %9 = vsyncpa [#allocation3], 0  ;;  %s1977_s0 = inlined_call_operand.hbm [shape: f32[2,16,128], index: 0, kind: input, shape index: {}]   ;;  %s1978_s1 = inlined_call_operand.hbm [shape: bf16[384,128], index: 1, kind: input, shape index: {}]   ;;  %s1979_s2 = inlined_call_operand.hbm [shape: bf16[384,128], index: 2, kind: input, shape index: {}]   ;;  %s1980_s3 = inlined_call_operand.hbm [shape: f32[4,8], index: 3, kind: input, shape index: {}]   ;;  %s1981_s4 = inlined_call_operand.hbm [shape: f32[2,16,128], index: 4, kind: output, shape index: {}]  }
   0x1   :  { %10 = vsyncpa [#allocation6], 0 }
   0x2   :  { %11 = vsyncpa [#allocation9], 0  ;;  %s30_s17 = sshll.u32 %s1978_s1, 4  ;;  %s31_s17 = int_to_ptr.hbm [resolvable:$true] %s30_s17 }
   0x3   :  { %12 = vsyncpa [#allocation4], 0  ;;  %s1632_s18 = smov [#allocation5]   ;;  %s17_s22 = sshll.u32 %s1977_s0, 4  ;;  %s18_s22 = int_to_ptr.hbm [resolvable:$true] %s17_s22 }
   0x4   :  { %s32_s19 = sshll.u32 %s1632_s18, 4  ;;  %s1633_s23 = smov 64   ;;  %s33_s19 = int_to_ptr.vmem [resolvable:$true] %s32_s19 }
   0x5   :  { %s1634_s24 = smov 4   ;;  %s1635_s25 = smov [#allocation2]  }
   0x6   :  { %38 = dma.hbm_to_vmem [thread:$0]  %s31_s17, 3072, %s33_s19, [#allocation6], %s1633_s23, %s1633_s23, %s1634_s24  }
   0x7   :  { %s19_s26 = sshll.u32 %s1635_s25, 4  ;;  %s1636_s27 = smov 128   ;;  %s20_s26 = int_to_ptr.vmem [resolvable:$true] %s19_s26 }
   0x8   :  { %s1637_s28 = smov 8   ;;  %s43_s30 = sshll.u32 %s1979_s2, 4  ;;  %s44_s30 = int_to_ptr.hbm [resolvable:$true] %s43_s30 }
   0x9   :  { %25 = dma.hbm_to_vmem [thread:$0]  %s18_s22, 512, %s20_s26, [#allocation3], %s1636_s27, %s1636_s27, %s1637_s28  }
   0xa   :  { %s1638_s5 = smov [#allocation7]   ;;  %s57_s8 = sshll.u32 %s1980_s3, 4  ;;  %s58_s8 = int_to_ptr.hbm [resolvable:$true] %s57_s8 }
   0xb   :  { %s45_s0 = sshll.u32 %s1638_s5, 4  ;;  %s1639_s9 = smov [#allocation8]   ;;  %s46_s0 = int_to_ptr.vmem [resolvable:$true] %s45_s0 }
   0xc   :  { %51 = dma.hbm_to_vmem [thread:$0]  %s44_s30, 3072, %s46_s0, [#allocation6], %s1633_s23, %s1633_s23, %s1634_s24  }
   0xd   :  { %s59_s10 = sshll.u32 %s1639_s9, 4  ;;  %s60_s10 = int_to_ptr.vmem [resolvable:$true] %s59_s10 }
   0xe   :  { %62 = dma.hbm_to_vmem [thread:$0]  %s58_s8, 64, %s60_s10, [#allocation9]  }
   0xf   :  { %1624 = dma.done.wait [#allocation3], 512  }
  0x10   :  { %1625 = vsyncadd [#allocation3], 4294966784 }
  0x11   :  { %1626 = dma.done.wait [#allocation6], 6144  }
  0x12   :  { %1627 = vsyncadd [#allocation6], 4294961152 }
  0x13   :  { %1628 = dma.done.wait [#allocation9], 64  }
  0x14   :  { %1629 = vsyncadd [#allocation9], 4294967232  ;;  %v1449_v0 = vld [vmem:[#allocation5 + $0x38] sm:$0xff]  ;;  %v1448_v3 = vld [vmem:[#allocation5 + $0x30] sm:$0xff]  ;;  %vm1982_vm0 = vcmask 1040384   ;;  %vm399_vm2 = vcmask 1047552   ;;  %v88_v56 = vlaneseq }
  0x15   :  { %v1457_v1 = vld [vmem:[#allocation5 + $0x78] sm:$0xff]  ;;  %598 = vmatpush.bf16.msra.mxu0 %v1449_v0  ;;  %v1456_v4 = vld [vmem:[#allocation5 + $0x70] sm:$0xff]  ;;  %v1447_v6 = vld [vmem:[#allocation5 + $0x28] sm:$0xff]  ;;  %vm389_vm1 = vsmask.f32 256  ;;  %v1989_v42 = vmov 0 }
  0x16   :  { %v1465_v2 = vld [vmem:[#allocation5 + $0xb8] sm:$0xff]  ;;  %617 = vmatpush.bf16.msra.mxu1 %v1457_v1  ;;  %v1464_v5 = vld [vmem:[#allocation5 + $0xb0] sm:$0xff]  ;;  %v1455_v7 = vld [vmem:[#allocation5 + $0x68] sm:$0xff]  ;;  %vm400_vm3 = vsmask.f32 7424  ;;  %v1991_v44 = vmov 0 }
  0x17   :  { %636 = vmatpush.bf16.msra.mxu2 %v1465_v2  ;;  %v1463_v8 = vld [vmem:[#allocation5 + $0xa8] sm:$0xff]  ;;  %v1682_v9 = vld [vmem:[#allocation2] sm:$0xff]  ;;  %v1445_v18 = vld [vmem:[#allocation5 + $0x18] sm:$0xff]  ;;  %v1715_v57 = vshrl.u32 %v88_v56, 7  ;;  %v1718_v59 = vand.u32 127, %v88_v56  ;;  %v1640_v1 = vmov 1.0  }
  0x18   :  { %v1684_v10 = vld [vmem:[#allocation2 + $0x8] sm:$0xff]  ;;  %v84_v11 = vpack.c.bf16 %v1682_v9, %v1682_v9  ;;  %v1446_v13 = vld [vmem:[#allocation5 + $0x20] sm:$0xff]  ;;  %v1453_v19 = vld [vmem:[#allocation5 + $0x58] sm:$0xff]  ;;  %s1641_s2 = smov [#allocation10]   ;;  %s1182_s13 = sshll.u32 %s1981_s4, 4  ;;  %s1183_s13 = int_to_ptr.hbm [resolvable:$true] %s1182_s13 }
  0x19   :  { %599 = vmatpush.bf16.msra.mxu0 %v1448_v3  ;;  %v85_v12 = vpack.c.bf16 %v1684_v10, %v1684_v10  ;;  %v1454_v14 = vld [vmem:[#allocation5 + $0x60] sm:$0xff]  ;;  %v1461_v21 = vld [vmem:[#allocation5 + $0x98] sm:$0xff]  ;;  %v1444_v22 = vld [vmem:[#allocation5 + $0x10] sm:$0xff]  ;;  %v121_v58 = vadd.s32 120, %v1715_v57  ;;  %v120_v61 = vadd.s32 112, %v1715_v57  ;;  %v119_v0 = vadd.s32 104, %v1715_v57 }
  0x1a   :  { %618 = vmatpush.bf16.msra.mxu1 %v1456_v4  ;;  %v1462_v15 = vld [vmem:[#allocation5 + $0xa0] sm:$0xff]  ;;  %v366_v16 = vunpack.c.l.b16 %v84_v11  ;;  %v1452_v23 = vld [vmem:[#allocation5 + $0x50] sm:$0xff]  ;;  %v1692_v28 = vld [vmem:[#allocation2 + $0x18] sm:$0xff]  ;;  %v118_v4 = vadd.s32 96, %v1715_v57  ;;  %s1180_s3 = sshll.u32 %s1641_s2, 4  ;;  %s1181_s3 = int_to_ptr.vmem [resolvable:$true] %s1180_s3 }
  0x1b   :  { %637 = vmatpush.bf16.msra.mxu2 %v1464_v5  ;;  %v367_v17 = vunpack.c.l.b16 %v85_v12  ;;  %v1460_v25 = vld [vmem:[#allocation5 + $0x90] sm:$0xff]  ;;  %v1443_v29 = vld [vmem:[#allocation5 + $0x8] sm:$0xff]  ;;  %v87_v33 = vpack.c.bf16 %v1692_v28, %v1692_v28  ;;  %v1442_v36 = vld [vmem:[#allocation5] sm:$0xff]  ;;  %v231_v60 = vand.u32 7, %v121_v58  ;;  %v224_v63 = vand.u32 7, %v120_v61 }
  0x1c   :  { %v1690_v27 = vld [vmem:[#allocation2 + $0x10] sm:$0xff]  ;;  %v1451_v30 = vld [vmem:[#allocation5 + $0x48] sm:$0xff]  ;;  %v1450_v37 = vld [vmem:[#allocation5 + $0x40] sm:$0xff]  ;;  %v217_v3 = vand.u32 7, %v119_v0  ;;  %v116_v12 = vadd.s32 80, %v1715_v57 }
  0x1d   :  { %600 = vmatpush.bf16.msra.mxu0 %v1447_v6  ;;  %v370_v20 = vpack.c.b16 %v367_v17, %v366_v16  ;;  %v86_v32 = vpack.c.bf16 %v1690_v27, %v1690_v27  ;;  %v1459_v34 = vld [vmem:[#allocation5 + $0x88] sm:$0xff]  ;;  %v369_v40 = vunpack.c.l.b16 %v87_v33  ;;  %v1458_v41 = vld [vmem:[#allocation5 + $0x80] sm:$0xff]  ;;  %vm1699_vm4 = vmand %vm1982_vm0, %vm389_vm1  ;;  %vm1722_vm6 = vcmp.eq.s32.totalorder %v231_v60, %v1718_v59 }
  0x1e   :  { %619 = vmatpush.bf16.msra.mxu1 %v1455_v7  ;;  %v1990_v42 = vsel %vm1699_vm4, 4294967295, %v1989_v42  ;;  %vm1703_vm5 = vmand %vm399_vm2, %vm400_vm3  ;;  %1310 = vmatpush.msk.msra.mxu3 %vm1722_vm6, %v1640_v1  ;;  %vm1731_vm7 = vcmp.eq.s32.totalorder %v224_v63, %v1718_v59  ;;  %vm1740_vm8 = vcmp.eq.s32.totalorder %v217_v3, %v1718_v59  ;;  %v210_v6 = vand.u32 7, %v118_v4  ;;  %v1479_v62 = vld [vmem:[#allocation7 + $0x68] sm:$0xff]  ;;  %v655_v16 = vld [vmem:[#allocation8] sm:$0x1] }
  0x1f   :  { %638 = vmatpush.bf16.msra.mxu2 %v1463_v8  ;;  %v373_v24 = vshrl.u32 %v370_v20, 16  ;;  %v376_v26 = vshll.u32 %v370_v20, 16  ;;  %v368_v39 = vunpack.c.l.b16 %v86_v32  ;;  %v1992_v44 = vsel %vm1703_vm5, 4294967295, %v1991_v44 }
  0x20   :  { %1311 = vmatpush.msk.msra.mxu3 %vm1731_vm7, %v1640_v1  ;;  %v117_v7 = vadd.s32 88, %v1715_v57  ;;  %vm1749_vm9 = vcmp.eq.s32.totalorder %v210_v6, %v1718_v59 }
  0x21   :  { %601 = vmatpush.bf16.msra.mxu0 %v1446_v13  ;;  %v375_v31 = vrot.slane %v373_v24, 7  ;;  %v393_v35 = vrot.slane %v376_v26, 1  ;;  %v371_v46 = vpack.c.b16 %v369_v40, %v368_v39 }
  0x22   :  { %620 = vmatpush.bf16.msra.mxu1 %v1454_v14  ;;  %1312 = vmatpush.msk.msra.mxu3 %vm1740_vm8, %v1640_v1  ;;  %v203_v11 = vand.u32 7, %v117_v7  ;;  %v196_v14 = vand.u32 7, %v116_v12 }
  0x23   :  { %639 = vmatpush.bf16.msra.mxu2 %v1462_v15  ;;  %v378_v38 = vor.u32 %v376_v26, %v375_v31  ;;  %v394_v43 = vor.u32 %v393_v35, %v373_v24  ;;  %v380_v48 = vshrl.u32 %v371_v46, 16  ;;  %v383_v49 = vshll.u32 %v371_v46, 16 }
  0x24   :  { %1313 = vmatpush.msk.msra.mxu3 %vm1749_vm9, %v1640_v1  ;;  %vm1758_vm10 = vcmp.eq.s32.totalorder %v203_v11, %v1718_v59  ;;  %v115_v15 = vadd.s32 72, %v1715_v57  ;;  %vm1767_vm11 = vcmp.eq.s32.totalorder %v196_v14, %v1718_v59  ;;  %v112_v26 = vadd.s32 48, %v1715_v57 }
  0x25   :  { %602 = vmatpush.bf16.msra.mxu0 %v1445_v18  ;;  %v391_v45 = vsel %vm1699_vm4, 0, %v378_v38  ;;  %v402_v47 = vsel %vm1703_vm5, %v394_v43, 0  ;;  %v382_v50 = vrot.slane %v380_v48, 7  ;;  %v395_v51 = vrot.slane %v383_v49, 1 }
  0x26   :  { %621 = vmatpush.bf16.msra.mxu1 %v1453_v19  ;;  %1314 = vmatpush.msk.msra.mxu3 %vm1758_vm10, %v1640_v1  ;;  %v189_v17 = vand.u32 7, %v115_v15  ;;  %v114_v18 = vadd.s32 64, %v1715_v57  ;;  %v111_v31 = vadd.s32 40, %v1715_v57  ;;  %v109_v35 = vadd.s32 24, %v1715_v57 }
  0x27   :  { %640 = vmatpush.bf16.msra.mxu2 %v1461_v21  ;;  %v385_v52 = vor.u32 %v383_v49, %v382_v50  ;;  %v396_v53 = vor.u32 %v395_v51, %v380_v48  ;;  %v113_v21 = vadd.s32 56, %v1715_v57  ;;  %v126_v51 = vand.u32 7, %v1715_v57  ;;  %v1486_v49 = vld [vmem:[#allocation7 + $0xa0] sm:$0xff] }
  0x28   :  { %1315 = vmatpush.msk.msra.mxu3 %vm1767_vm11, %v1640_v1  ;;  %vm1776_vm12 = vcmp.eq.s32.totalorder %v189_v17, %v1718_v59  ;;  %v161_v33 = vand.u32 7, %v111_v31  ;;  %v1470_v50 = vld [vmem:[#allocation7 + $0x20] sm:$0xff] }
  0x29   :  { %603 = vmatpush.bf16.msra.mxu0 %v1444_v22  ;;  %v392_v54 = vsel %vm1699_vm4, 0, %v385_v52  ;;  %v403_v55 = vsel %vm1703_vm5, %v396_v53, 0  ;;  %v2021_v52 = vmov 0  ;;  %vm1853_vm4 = vcmp.eq.s32.totalorder %v126_v51, %v1718_v59 }
  0x2a   :  { %622 = vmatpush.bf16.msra.mxu1 %v1452_v23  ;;  %1316 = vmatpush.msk.msra.mxu3 %vm1776_vm12, %v1640_v1  ;;  %vm1815_vm1 = vcmp.eq.s32.totalorder %v161_v33, %v1718_v59 }
  0x2b   :  { %641 = vmatpush.bf16.msra.mxu2 %v1460_v25  ;;  %v175_v25 = vand.u32 7, %v113_v21 }
  0x2d   :  { %604 = vmatpush.bf16.msra.mxu0 %v1443_v29  ;;  %vm1794_vm14 = vcmp.eq.s32.totalorder %v175_v25, %v1718_v59  ;;  %v656_v29 = vld [vmem:[#allocation8 + $0x1] sm:$0x1] }
  0x2e   :  { %623 = vmatpush.bf16.msra.mxu1 %v1451_v30  ;;  %v168_v30 = vand.u32 7, %v112_v26 }
  0x2f   :  { %642 = vmatpush.bf16.msra.mxu2 %v1459_v34  ;;  %v110_v34 = vadd.s32 32, %v1715_v57 }
  0x30   :  { %vm1803_vm15 = vcmp.eq.s32.totalorder %v168_v30, %v1718_v59 }
  0x31   :  { %605 = vmatpush.bf16.msra.mxu0 %v1442_v36  ;;  %v108_v36 = vadd.s32 16, %v1715_v57  ;;  %v154_v40 = vand.u32 7, %v110_v34 }
  0x32   :  { %624 = vmatpush.bf16.msra.mxu1 %v1450_v37  ;;  %v107_v37 = vadd.s32 8, %v1715_v57 }
  0x33   :  { %643 = vmatpush.bf16.msra.mxu2 %v1458_v41  ;;  %vm1823_vm2 = vcmp.eq.s32.totalorder %v154_v40, %v1718_v59 }
  0x34   :  { %606 = vmatmul.bf16.vlgmr.msra.gmra.mxu0 %v391_v45  ;;  %v147_v45 = vand.u32 7, %v109_v35  ;;  %v133_v48 = vand.u32 7, %v107_v37 }
  0x35   :  { %625 = vmatmul.bf16.vlgmr.msra.gmra.mxu1 %v370_v20  ;;  %v182_v20 = vand.u32 7, %v114_v18 }
  0x36   :  { %644 = vmatmul.bf16.vlgmr.msra.gmra.mxu2 %v402_v47  ;;  %vm1831_vm3 = vcmp.eq.s32.totalorder %v147_v45, %v1718_v59  ;;  %vm1845_vm5 = vcmp.eq.s32.totalorder %v133_v48, %v1718_v59  ;;  %v1477_v47 = vld [vmem:[#allocation7 + $0x58] sm:$0xff] }
  0x37   :  { %vm1785_vm13 = vcmp.eq.s32.totalorder %v182_v20, %v1718_v59  ;;  %v2022_v52 = vsel %vm1845_vm5, 4294967295, %v2021_v52 }
  0x38   :  { %1317 = vmatpush.msk.msra.mxu3 %vm1785_vm13, %v1640_v1 }
  0x3a   :  { %1318 = vmatpush.msk.msra.mxu3 %vm1794_vm14, %v1640_v1 }
  0x3c   :  { %1319 = vmatpush.msk.msra.mxu3 %vm1803_vm15, %v1640_v1 }
  0x3e   :  { %1320 = vmatpush.msk.msra.mxu3 %vm1815_vm1, %v1640_v1 }
  0x40   :  { %1321 = vmatpush.msk.msra.mxu3 %vm1823_vm2, %v1640_v1 }
  0x42   :  { %1322 = vmatpush.msk.msra.mxu3 %vm1831_vm3, %v1640_v1 }
  0x44   :  { %611 = vmatmul.bf16.gmra.mxu0 %v392_v54  ;;  %v2023_v54 = vmov 0 }
  0x45   :  { %630 = vmatmul.bf16.gmra.mxu1 %v371_v46  ;;  %v140_v46 = vand.u32 7, %v108_v36  ;;  %v2024_v54 = vsel %vm1853_vm4, 4294967295, %v2023_v54 }
  0x46   :  { %649 = vmatmul.bf16.gmra.mxu2 %v403_v55 }
  0x47   :  { %vm1836_vm0 = vcmp.eq.s32.totalorder %v140_v46, %v1718_v59 }
  0x48   :  { %1323 = vmatpush.msk.msra.mxu3 %vm1836_vm0, %v1640_v1 }
  0x4a   :  { %1324 = vmatpush.msk.msra.mxu3 %vm1845_vm5, %v1640_v1 }
  0x4c   :  { %1325 = vmatpush.msk.msra.mxu3 %vm1853_vm4, %v1640_v1  ;;  %vm2025_vm4 = vcmask 1040384  }
  0xb1   :  { %v607_v22 = vpop.f32.mrf.mxu0 }
  0xb2   :  { %v626_v23 = vpop.f32.mrf.mxu1 }
  0xb3   :  { %v627_v58 = vadd.f32 %v626_v23, %v607_v22 }
  0xb9   :  { %v645_v38 = vpop.f32.mrf.mxu2  ;;  %v609_v41 = vpop.f32.mrf.mxu0 }
  0xba   :  { %v628_v43 = vpop.f32.mrf.mxu1  ;;  %v1865_v3 = vadd.f32 %v645_v38, %v627_v58  ;;  %v94_v58 = vand.u32 7, %v1718_v59  ;;  %v1480_v59 = vld [vmem:[#allocation7 + $0x70] sm:$0xff] }
  0xbb   :  { %v629_v60 = vadd.f32 %v628_v43, %v609_v41 }
  0xbc   :  { %v666_v12 = vmul.f32 %v1865_v3, %v1865_v3  ;;  %vm1886_vm5 = vcmp.eq.s32.totalorder %v94_v58, %v1715_v57  ;;  %v1488_v57 = vld [vmem:[#allocation7 + $0xb0] sm:$0xff] }
  0xbd   :  { %1326 = vmatpush.msk.msrb.mxu3 %vm1886_vm5, %v1640_v1 }
  0xc1   :  { %v647_v53 = vpop.f32.mrf.mxu2  ;;  %v612_v55 = vpop.f32.mrf.mxu0 }
  0xc2   :  { %v631_v56 = vpop.f32.mrf.mxu1  ;;  %v1863_v0 = vadd.f32 %v647_v53, %v629_v60 }
  0xc3   :  { %v632_v61 = vadd.f32 %v631_v56, %v612_v55 }
  0xc4   :  { %v667_v11 = vmul.f32 %v1863_v0, %v1863_v0  ;;  %v657_v14 = vadd.f32 %v1863_v0, %v1865_v3 }
  0xc6   :  { %v670_v20 = vadd.f32 %v667_v11, %v666_v12  ;;  %v1473_v12 = vld [vmem:[#allocation7 + $0x38] sm:$0xff] }
  0xc7   :  { %1001 = vmatpush.bf16.msrb.mxu0 %v1473_v12 }
  0xc9   :  { %v650_v63 = vpop.f32.mrf.mxu2  ;;  %v614_v6 = vpop.f32.mrf.mxu0 }
  0xca   :  { %v1867_v4 = vadd.f32 %v650_v63, %v632_v61  ;;  %v633_v7 = vpop.f32.mrf.mxu1 }
  0xcb   :  { %v634_v17 = vadd.f32 %v633_v7, %v614_v6  ;;  %v1481_v6 = vld [vmem:[#allocation7 + $0x78] sm:$0xff] }
  0xcc   :  { %v668_v15 = vmul.f32 %v1867_v4, %v1867_v4  ;;  %v658_v21 = vadd.f32 %v657_v14, %v1867_v4  ;;  %v1489_v7 = vld [vmem:[#allocation7 + $0xb8] sm:$0xff]  ;;  %1020 = vmatpush.bf16.msrb.mxu1 %v1481_v6  ;;  %v1472_v14 = vld [vmem:[#allocation7 + $0x30] sm:$0xff] }
  0xcd   :  { %1039 = vmatpush.bf16.msrb.mxu2 %v1489_v7  ;;  %1002 = vmatpush.bf16.msrb.mxu0 %v1472_v14 }
  0xce   :  { %v671_v23 = vadd.f32 %v670_v20, %v668_v15  ;;  %v1487_v15 = vld [vmem:[#allocation7 + $0xa8] sm:$0xff]  ;;  %v1478_v20 = vld [vmem:[#allocation7 + $0x60] sm:$0xff] }
  0xd0   :  { %1021 = vmatpush.bf16.msrb.mxu1 %v1480_v59 }
  0xd1   :  { %v652_v18 = vpop.f32.mrf.mxu2  ;;  %1040 = vmatpush.bf16.msrb.mxu2 %v1488_v57 }
  0xd2   :  { %v1878_v22 = vadd.f32 %v652_v18, %v634_v17  ;;  %v1471_v17 = vld [vmem:[#allocation7 + $0x28] sm:$0xff] }
  0xd3   :  { %1003 = vmatpush.bf16.msrb.mxu0 %v1471_v17 }
  0xd4   :  { %v659_v25 = vadd.f32 %v658_v21, %v1878_v22  ;;  %v669_v26 = vmul.f32 %v1878_v22, %v1878_v22  ;;  %1022 = vmatpush.bf16.msrb.mxu1 %v1479_v62 }
  0xd5   :  { %1041 = vmatpush.bf16.msrb.mxu2 %v1487_v15 }
  0xd6   :  { %v660_v30 = vrot.slane %v659_v25, 4  ;;  %v672_v31 = vadd.f32 %v671_v23, %v669_v26 }
  0xd7   :  { %1004 = vmatpush.bf16.msrb.mxu0 %v1470_v50 }
  0xd8   :  { %v661_v33 = vadd.f32 %v660_v30, %v659_v25  ;;  %v673_v34 = vrot.slane %v672_v31, 4  ;;  %1023 = vmatpush.bf16.msrb.mxu1 %v1478_v20  ;;  %v1476_v30 = vld [vmem:[#allocation7 + $0x50] sm:$0xff] }
  0xd9   :  { %1042 = vmatpush.bf16.msrb.mxu2 %v1486_v49 }
  0xda   :  { %v662_v35 = vrot.slane %v661_v33, 2  ;;  %v674_v36 = vadd.f32 %v673_v34, %v672_v31  ;;  %v1469_v31 = vld [vmem:[#allocation7 + $0x18] sm:$0xff]  ;;  %v1468_v34 = vld [vmem:[#allocation7 + $0x10] sm:$0xff] }
  0xdb   :  { %1005 = vmatpush.bf16.msrb.mxu0 %v1469_v31 }
  0xdc   :  { %v663_v37 = vadd.f32 %v662_v35, %v661_v33  ;;  %v675_v38 = vrot.slane %v674_v36, 2  ;;  %1024 = vmatpush.bf16.msrb.mxu1 %v1477_v47  ;;  %v1475_v33 = vld [vmem:[#allocation7 + $0x48] sm:$0xff]  ;;  %v1474_v35 = vld [vmem:[#allocation7 + $0x40] sm:$0xff] }
  0xde   :  { %v664_v40 = vrot.slane %v663_v37, 1  ;;  %v676_v41 = vadd.f32 %v675_v38, %v674_v36  ;;  %v1467_v36 = vld [vmem:[#allocation7 + $0x8] sm:$0xff]  ;;  %v1466_v38 = vld [vmem:[#allocation7] sm:$0xff] }
  0xdf   :  { %1006 = vmatpush.bf16.msrb.mxu0 %v1468_v34 }
  0xe0   :  { %v677_v43 = vrot.slane %v676_v41, 1  ;;  %v665_v45 = vadd.f32 %v664_v40, %v663_v37  ;;  %1025 = vmatpush.bf16.msrb.mxu1 %v1476_v30  ;;  %v1482_v37 = vld [vmem:[#allocation7 + $0x80] sm:$0xff] }
  0xe2   :  { %v678_v46 = vadd.f32 %v677_v43, %v676_v41 }
  0xe3   :  { %1007 = vmatpush.bf16.msrb.mxu0 %v1467_v36 }
  0xe4   :  { %v680_v48 = vsel %vm2025_vm4, %v665_v45, %v678_v46  ;;  %1026 = vmatpush.bf16.msrb.mxu1 %v1475_v33 }
  0xe5   :  { %697 = vmatmul.f32.vlgmr.msra.gmra.mxu3 %v680_v48 }
  0xe6   :  { %1424 = vmatpush.msk.msra.mxu3 %vm1722_vm6, %v1640_v1 }
  0xe7   :  { %1008 = vmatpush.bf16.msrb.mxu0 %v1466_v38 }
  0xe8   :  { %1425 = vmatpush.msk.msra.mxu3 %vm1731_vm7, %v1640_v1  ;;  %1027 = vmatpush.bf16.msrb.mxu1 %v1474_v35 }
  0xea   :  { %1426 = vmatpush.msk.msra.mxu3 %vm1740_vm8, %v1640_v1  ;;  %vm729_vm8 = vcmask 64512  }
  0xec   :  { %1427 = vmatpush.msk.msra.mxu3 %vm1749_vm9, %v1640_v1  ;;  %vm2028_vm9 = vnez %v2022_v52  ;;  %v1485_v52 = vld [vmem:[#allocation7 + $0x98] sm:$0xff] }
  0xed   :  { %1043 = vmatpush.bf16.msrb.mxu2 %v1485_v52 }
  0xee   :  { %1428 = vmatpush.msk.msra.mxu3 %vm1758_vm10, %v1640_v1  ;;  %vm2029_vm10 = vcmask 1040384  }
  0xf0   :  { %1429 = vmatpush.msk.msra.mxu3 %vm1767_vm11, %v1640_v1  ;;  %vm2030_vm11 = vnez %v2024_v54  ;;  %v1484_v54 = vld [vmem:[#allocation7 + $0x90] sm:$0xff] }
  0xf1   :  { %1044 = vmatpush.bf16.msrb.mxu2 %v1484_v54 }
  0xf2   :  { %1430 = vmatpush.msk.msra.mxu3 %vm1776_vm12, %v1640_v1  ;;  %vm2033_vm12 = vmmov %vm2029_vm10 }
  0xf4   :  { %1431 = vmatpush.msk.msra.mxu3 %vm1785_vm13, %v1640_v1 }
  0xf6   :  { %1432 = vmatpush.msk.msra.mxu3 %vm1794_vm14, %v1640_v1 }
  0xf8   :  { %1433 = vmatpush.msk.msra.mxu3 %vm1803_vm15, %v1640_v1 }
  0xfa   :  { %1434 = vmatpush.msk.msra.mxu3 %vm1815_vm1, %v1640_v1  ;;  %vm2034_vm1 = vmmov %vm2029_vm10 }
  0xfc   :  { %1435 = vmatpush.msk.msra.mxu3 %vm1823_vm2, %v1640_v1 }
  0xfe   :  { %1436 = vmatpush.msk.msra.mxu3 %vm1831_vm3, %v1640_v1 }
 0x100   :  { %1437 = vmatpush.msk.msra.mxu3 %vm1836_vm0, %v1640_v1  ;;  %vm2031_vm0 = vnez %v1990_v42 }
 0x102   :  { %1438 = vmatpush.msk.msra.mxu3 %vm2028_vm9, %v1640_v1 }
 0x104   :  { %1439 = vmatpush.msk.msra.mxu3 %vm2030_vm11, %v1640_v1 }
 0x168   :  { %v698_v51 = vpop.f32.mrf.mxu3 }
 0x169   :  { %v701_v53 = vmul.f32 0.001953125, %v698_v51 }
 0x16b   :  { %v702_v55 = vmul.f32 %v701_v53, %v701_v53 }
 0x16d   :  { %v704_v56 = vrot.slane %v702_v55, 7 }
 0x16f   :  { %v706_v60 = vsub.f32 %v701_v53, %v704_v56 }
 0x171   :  { %v707_v63 = vmax.f32 %v706_v60, 0.0 }
 0x173   :  { %v708_v11 = vadd.f32 1e-05, %v707_v63 }
 0x175   :  { %1500 = vrsqrt.f32 %v708_v11  ;;  %vm715_vm6 = vweird.f32 %v708_v11 }
 0x17b   :  { %v1501_v18 = vpop.eup %1500 }
 0x17c   :  { %v710_v2 = vmul.f32 %v1501_v18, %v708_v11  ;;  %vm716_vm4 = vweird.f32 %v1501_v18 }
 0x17d   :  { %vm717_vm7 = vmor %vm715_vm6, %vm716_vm4 }
 0x17e   :  { %v711_v5 = vmul.f32 %v1501_v18, %v710_v2 }
 0x180   :  { %v712_v8 = vmul.f32 0.5, %v711_v5 }
 0x182   :  { %v713_v13 = vsub.f32 1.5, %v712_v8 }
 0x184   :  { %v714_v21 = vmul.f32 %v1501_v18, %v713_v13 }
 0x186   :  { %v718_v19 = vsel %vm717_vm7, %v1501_v18, %v714_v21 }
 0x187   :  { %v720_v23 = vrot.slane %v718_v19, 1 }
 0x189   :  { %v722_v24 = vmul.f32 %v720_v23, %v655_v16 }
 0x18b   :  { %v723_v25 = vmul.f32 %v722_v24, %v701_v53 }
 0x18d   :  { %v724_v32 = vsub.f32 %v656_v29, %v723_v25 }
 0x18f   :  { %v726_v26 = vrot.slane %v724_v32, 7 }
 0x191   :  { %v728_v39 = vsel %vm2029_vm10, %v722_v24, %v726_v26 }
 0x192   :  { %1327 = vmatmul.msk.f32.vlgmr.msrb.gmra.mxu3 %vm729_vm8, %v728_v39 }
 0x193   :  { %1440 = vmatpush.msk.msrb.mxu3 %vm1886_vm5, %v1640_v1  ;;  %v1483_v1 = vld [vmem:[#allocation7 + $0x88] sm:$0xff]  ;;  %vm2032_vm5 = vnez %v1992_v44 }
 0x194   :  { %1045 = vmatpush.bf16.msrb.mxu2 %v1483_v1 }
 0x198   :  { %1046 = vmatpush.bf16.msrb.mxu2 %v1482_v37 }
 0x215   :  { %v750_v40 = vpop.f32.mrf.mxu3 }
 0x216   :  { %v753_v41 = vperm.slane %v750_v40, 0  ;;  %v758_v43 = vperm.slane %v750_v40, 1 }
 0x218   :  { %v754_v45 = vmul.f32 %v753_v41, %v1865_v3  ;;  %v755_v46 = vmul.f32 %v753_v41, %v1863_v0  ;;  %v756_v48 = vmul.f32 %v753_v41, %v1867_v4  ;;  %v757_v51 = vmul.f32 %v753_v41, %v1878_v22 }
 0x21a   :  { %v759_v53 = vadd.f32 %v758_v43, %v754_v45  ;;  %v760_v55 = vadd.f32 %v758_v43, %v755_v46  ;;  %v761_v56 = vadd.f32 %v758_v43, %v756_v48  ;;  %v762_v58 = vadd.f32 %v758_v43, %v757_v51 }
 0x21c   :  { %v763_v60 = vmax.f32 %v759_v53, 0.0  ;;  %v764_v61 = vmax.f32 %v760_v55, 0.0  ;;  %v765_v7 = vmax.f32 %v761_v56, 0.0  ;;  %v766_v11 = vmax.f32 %v762_v58, 0.0 }
 0x21e   :  { %v767_v63 = vpack.c.bf16 %v763_v60, %v763_v60  ;;  %v768_v6 = vpack.c.bf16 %v764_v61, %v764_v61  ;;  %v769_v3 = vpack.c.bf16 %v765_v7, %v765_v7  ;;  %v770_v14 = vpack.c.bf16 %v766_v11, %v766_v11 }
 0x220   :  { %v775_v12 = vunpack.c.l.b16 %v767_v63  ;;  %v776_v59 = vunpack.c.l.b16 %v768_v6  ;;  %v777_v15 = vunpack.c.l.b16 %v769_v3  ;;  %v778_v17 = vunpack.c.l.b16 %v770_v14 }
 0x222   :  { %v779_v57 = vpack.c.b16 %v776_v59, %v775_v12  ;;  %v780_v8 = vpack.c.b16 %v778_v17, %v777_v15 }
 0x224   :  { %1028 = vmatmul.bf16.vlgmr.msrb.gmra.mxu1 %v779_v57  ;;  %v782_v0 = vshrl.u32 %v779_v57, 16  ;;  %v785_v4 = vshll.u32 %v779_v57, 16  ;;  %v789_v13 = vshrl.u32 %v780_v8, 16  ;;  %v792_v21 = vshll.u32 %v780_v8, 16 }
 0x226   :  { %v784_v62 = vrot.slane %v782_v0, 7  ;;  %v799_v22 = vrot.slane %v785_v4, 1  ;;  %v791_v16 = vrot.slane %v789_v13, 7  ;;  %v801_v19 = vrot.slane %v792_v21, 1 }
 0x228   :  { %v787_v18 = vor.u32 %v785_v4, %v784_v62  ;;  %v800_v2 = vor.u32 %v799_v22, %v782_v0  ;;  %v794_v23 = vor.u32 %v792_v21, %v791_v16  ;;  %v802_v24 = vor.u32 %v801_v19, %v789_v13 }
 0x22a   :  { %v797_v20 = vsel %vm2031_vm0, 0, %v787_v18  ;;  %v805_v5 = vsel %vm2032_vm5, %v800_v2, 0  ;;  %v798_v29 = vsel %vm2031_vm0, 0, %v794_v23  ;;  %v806_v25 = vsel %vm2032_vm5, %v802_v24, 0  ;;  %v1058_v23 = vld [vmem:[#allocation8 + $0x2] sm:$0x1] }
 0x22b   :  { %1009 = vmatmul.bf16.vlgmr.msrb.gmra.mxu0 %v797_v20  ;;  %1047 = vmatmul.bf16.vlgmr.msrb.gmra.mxu2 %v805_v5 }
 0x234   :  { %1033 = vmatmul.bf16.gmra.mxu1 %v780_v8 }
 0x23b   :  { %1014 = vmatmul.bf16.gmra.mxu0 %v798_v29  ;;  %1052 = vmatmul.bf16.gmra.mxu2 %v806_v25 }
 0x2a1   :  { %v1029_v32 = vpop.f32.mrf.mxu1 }
 0x2a8   :  { %v1010_v26 = vpop.f32.mrf.mxu0 }
 0x2a9   :  { %v1031_v47 = vpop.f32.mrf.mxu1  ;;  %v1030_v54 = vadd.f32 %v1029_v32, %v1010_v26  ;;  %v1059_v32 = vld [vmem:[#allocation8 + $0x3] sm:$0x1] }
 0x2ae   :  { %v1048_v39 = vpop.f32.mrf.mxu2 }
 0x2af   :  { %v1049_v35 = vadd.f32 %v1048_v39, %v1030_v54 }
 0x2b0   :  { %v1012_v49 = vpop.f32.mrf.mxu0 }
 0x2b1   :  { %v1034_v52 = vpop.f32.mrf.mxu1  ;;  %v1032_v31 = vadd.f32 %v1031_v47, %v1012_v49  ;;  %v1069_v38 = vmul.f32 %v1049_v35, %v1049_v35 }
 0x2b6   :  { %v1050_v50 = vpop.f32.mrf.mxu2 }
 0x2b7   :  { %v1958_v34 = vadd.f32 %v1050_v50, %v1032_v31 }
 0x2b8   :  { %v1015_v30 = vpop.f32.mrf.mxu0 }
 0x2b9   :  { %v1035_v42 = vadd.f32 %v1034_v52, %v1015_v30  ;;  %v1070_v36 = vmul.f32 %v1958_v34, %v1958_v34  ;;  %v1036_v37 = vpop.f32.mrf.mxu1  ;;  %v1060_v40 = vadd.f32 %v1958_v34, %v1049_v35 }
 0x2bb   :  { %v1073_v46 = vadd.f32 %v1070_v36, %v1069_v38 }
 0x2be   :  { %v1053_v33 = vpop.f32.mrf.mxu2 }
 0x2bf   :  { %v1054_v1 = vadd.f32 %v1053_v33, %v1035_v42 }
 0x2c0   :  { %v1017_v44 = vpop.f32.mrf.mxu0 }
 0x2c1   :  { %v1071_v41 = vmul.f32 %v1054_v1, %v1054_v1  ;;  %v1037_v43 = vadd.f32 %v1036_v37, %v1017_v44  ;;  %v1061_v48 = vadd.f32 %v1060_v40, %v1054_v1 }
 0x2c3   :  { %v1074_v53 = vadd.f32 %v1073_v46, %v1071_v41 }
 0x2c6   :  { %v1055_v45 = vpop.f32.mrf.mxu2 }
 0x2c7   :  { %v1056_v51 = vadd.f32 %v1055_v45, %v1037_v43 }
 0x2c9   :  { %v1062_v55 = vadd.f32 %v1061_v48, %v1056_v51  ;;  %v1072_v56 = vmul.f32 %v1056_v51, %v1056_v51 }
 0x2cb   :  { %v1063_v58 = vrot.slane %v1062_v55, 4  ;;  %v1075_v60 = vadd.f32 %v1074_v53, %v1072_v56 }
 0x2cd   :  { %v1064_v61 = vadd.f32 %v1063_v58, %v1062_v55  ;;  %v1076_v63 = vrot.slane %v1075_v60, 4 }
 0x2cf   :  { %v1065_v6 = vrot.slane %v1064_v61, 2  ;;  %v1077_v7 = vadd.f32 %v1076_v63, %v1075_v60 }
 0x2d1   :  { %v1066_v11 = vadd.f32 %v1065_v6, %v1064_v61  ;;  %v1078_v12 = vrot.slane %v1077_v7, 2 }
 0x2d3   :  { %v1067_v59 = vrot.slane %v1066_v11, 1  ;;  %v1079_v57 = vadd.f32 %v1078_v12, %v1077_v7 }
 0x2d5   :  { %v1080_v3 = vrot.slane %v1079_v57, 1  ;;  %v1068_v14 = vadd.f32 %v1067_v59, %v1066_v11 }
 0x2d7   :  { %v1081_v0 = vadd.f32 %v1080_v3, %v1079_v57 }
 0x2d9   :  { %v1082_v4 = vsel %vm2033_vm12, %v1068_v14, %v1081_v0 }
 0x2da   :  { %1099 = vmatmul.f32.vlgmr.msra.gmra.mxu3 %v1082_v4 }
 0x35d   :  { %v1100_v62 = vpop.f32.mrf.mxu3 }
 0x35e   :  { %v1103_v22 = vmul.f32 0.001953125, %v1100_v62 }
 0x360   :  { %v1104_v15 = vmul.f32 %v1103_v22, %v1103_v22 }
 0x362   :  { %v1106_v17 = vrot.slane %v1104_v15, 7 }
 0x364   :  { %v1108_v18 = vsub.f32 %v1103_v22, %v1106_v17 }
 0x366   :  { %v1109_v2 = vmax.f32 %v1108_v18, 0.0 }
 0x368   :  { %v1110_v20 = vadd.f32 1e-05, %v1109_v2 }
 0x36a   :  { %1502 = vrsqrt.f32 %v1110_v20  ;;  %vm1117_vm14 = vweird.f32 %v1110_v20 }
 0x370   :  { %v1503_v5 = vpop.eup %1502 }
 0x371   :  { %v1112_v8 = vmul.f32 %v1503_v5, %v1110_v20  ;;  %vm1118_vm13 = vweird.f32 %v1503_v5 }
 0x372   :  { %vm1119_vm15 = vmor %vm1117_vm14, %vm1118_vm13 }
 0x373   :  { %v1113_v13 = vmul.f32 %v1503_v5, %v1112_v8 }
 0x375   :  { %v1114_v21 = vmul.f32 0.5, %v1113_v13 }
 0x377   :  { %v1115_v16 = vsub.f32 1.5, %v1114_v21 }
 0x379   :  { %v1116_v19 = vmul.f32 %v1503_v5, %v1115_v16 }
 0x37b   :  { %v1120_v24 = vsel %vm1119_vm15, %v1503_v5, %v1116_v19 }
 0x37c   :  { %v1122_v29 = vrot.slane %v1120_v24, 1 }
 0x37e   :  { %v1124_v25 = vmul.f32 %v1122_v29, %v1058_v23 }
 0x380   :  { %v1125_v26 = vmul.f32 %v1124_v25, %v1103_v22 }
 0x382   :  { %v1126_v39 = vsub.f32 %v1059_v32, %v1125_v26 }
 0x384   :  { %v1128_v47 = vrot.slane %v1126_v39, 7 }
 0x386   :  { %v1130_v49 = vsel %vm2034_vm1, %v1124_v25, %v1128_v47 }
 0x387   :  { %1441 = vmatmul.msk.f32.vlgmr.msrb.gmra.mxu3 %vm729_vm8, %v1130_v49 }
 0x40a   :  { %v1151_v50 = vpop.f32.mrf.mxu3 }
 0x40b   :  { %v1154_v30 = vperm.slane %v1151_v50, 0  ;;  %v1159_v52 = vperm.slane %v1151_v50, 1 }
 0x40d   :  { %v1155_v31 = vmul.f32 %v1154_v30, %v1049_v35  ;;  %v1156_v33 = vmul.f32 %v1154_v30, %v1958_v34  ;;  %v1157_v54 = vmul.f32 %v1154_v30, %v1054_v1  ;;  %v1158_v42 = vmul.f32 %v1154_v30, %v1056_v51 }
 0x40f   :  { %v1160_v44 = vadd.f32 %v1159_v52, %v1155_v31  ;;  %v1161_v36 = vadd.f32 %v1159_v52, %v1156_v33  ;;  %v1162_v37 = vadd.f32 %v1159_v52, %v1157_v54  ;;  %v1163_v38 = vadd.f32 %v1159_v52, %v1158_v42 }
 0x411   :  { %v1164_v40 = vadd.f32 %v1160_v44, %v1682_v9  ;;  %v1165_v41 = vadd.f32 %v1161_v36, %v1684_v10  ;;  %v1166_v43 = vadd.f32 %v1162_v37, %v1690_v27  ;;  %v1167_v45 = vadd.f32 %v1163_v38, %v1692_v28 }
 0x413   :  { %v1168_v46 = vmax.f32 %v1164_v40, 0.0  ;;  %v1169_v48 = vmax.f32 %v1165_v41, 0.0  ;;  %v1170_v53 = vmax.f32 %v1166_v43, 0.0  ;;  %v1171_v34 = vmax.f32 %v1167_v45, 0.0 }
 0x415   :  { %1172 = vst [vmem:[#allocation10] sm:$0xff] %v1168_v46 }
 0x416   :  { %1173 = vst [vmem:[#allocation10 + $0x8] sm:$0xff] %v1169_v48 }
 0x417   :  { %1174 = vst [vmem:[#allocation10 + $0x10] sm:$0xff] %v1170_v53 }
 0x418   :  { %1175 = vst [vmem:[#allocation10 + $0x18] sm:$0xff] %v1171_v34 }
 0x419   :  { %1188 = dma.vmem_to_hbm [thread:$0]  %s1181_s3, 512, %s1183_s13, [#allocation4], %s1636_s27, %s1636_s27, %s1637_s28  }
 0x41a   :  { %1630 = dma.done.wait [#allocation4], 512  }
 0x41b   :  { %1631 = vsyncadd [#allocation4], 4294966784 }
 0x41c   :  { %1193 = vsyncpa [#allocation3], 1 }
 0x41d   :  { %1194 = vsyncpa [#allocation6], 1 }
 0x41e   :  { %1195 = vsyncpa [#allocation9], 1 }
 0x41f   :  { %1196 = vsyncpa [#allocation4], 1 }

</bundles_post_ra>
